<compile_context>
chip_gen: v7x
topology: tpu7x:2x2x1
jax: 0.10.0
libtpu: 0.0.40
codegen_flags: <defaults>
</compile_context>

<pallas_src>
import jax
import jax.numpy as jnp
from jax.experimental import pallas as pl
from jax.experimental.pallas import tpu as pltpu


_LANE_WIDTH = 1024      # lane-dense last dim (multiple of 128)
_MAX_TILE_ROWS = 512    # 512 x 1024 f32 = 2 MiB per tile (fits every gen)


def _round_up(x, m):
    return ((x + m - 1) // m) * m


def _logreg_kernel(w_ref, b_ref, x_ref, o_ref):
    # w_ref, b_ref are (1, 1) scalars in SMEM; x_ref/o_ref are VMEM tiles.
    w = w_ref[0, 0]
    b = b_ref[0, 0]
    z = x_ref[...] * w + b               # Linear(1, 1): x @ W^T + b
    o_ref[...] = jax.nn.sigmoid(z)       # F.sigmoid (exp runs on EUP)


def logistic_regression_forward(x, weight, bias):
    """x: (N, 1) float32; weight: (1, 1); bias: (1,). Returns (N, 1) float32."""
    n, f = x.shape
    assert f == 1, "Linear(1, 1) expects in_features == 1"
    x = x.astype(jnp.float32)
    w_smem = weight.reshape(1, 1).astype(jnp.float32)
    b_smem = bias.reshape(1, 1).astype(jnp.float32)

    # --- Lane-dense repack: (N, 1) -> (rows_padded, 1024), zero-padded. ---
    rows = pl.cdiv(n, _LANE_WIDTH)
    tile_rows = min(_MAX_TILE_ROWS, _round_up(rows, 8))   # (8,128)-aligned tile
    rows_padded = _round_up(rows, tile_rows)
    total = rows_padded * _LANE_WIDTH
    x_flat = jnp.pad(x.reshape(-1), (0, total - n))
    x2d = x_flat.reshape(rows_padded, _LANE_WIDTH)

    grid = (rows_padded // tile_rows,)

    out2d = pl.pallas_call(
        _logreg_kernel,
        out_shape=jax.ShapeDtypeStruct((rows_padded, _LANE_WIDTH), jnp.float32),
        grid_spec=pltpu.PrefetchScalarGridSpec(
            num_scalar_prefetch=0,
            grid=grid,
            in_specs=[
                pl.BlockSpec((1, 1), lambda i: (0, 0),
                             memory_space=pltpu.MemorySpace.SMEM),
                pl.BlockSpec((1, 1), lambda i: (0, 0),
                             memory_space=pltpu.MemorySpace.SMEM),
                pl.BlockSpec((tile_rows, _LANE_WIDTH), lambda i: (i, 0)),
            ],
            out_specs=pl.BlockSpec((tile_rows, _LANE_WIDTH), lambda i: (i, 0)),
        ),
        compiler_params=pltpu.CompilerParams(
            dimension_semantics=("parallel",)),
    )(w_smem, b_smem, x2d)

    # Drop the padding, restore the (N, 1) PyTorch layout.
    return out2d.reshape(-1)[:n].reshape(n, 1)


if __name__ == "__main__":
    key = jax.random.PRNGKey(0)
    kx, kw, kb, kx2 = jax.random.split(key, 4)

    # Deterministic parameter init (PyTorch Linear(1,1) inits in U(-1, 1)).
    weight = jax.random.uniform(kw, (1, 1), jnp.float32, minval=-1.0, maxval=1.0)
    bias = jax.random.uniform(kb, (1,), jnp.float32, minval=-1.0, maxval=1.0)

    # Small input consistent with the module: batch=8, in_features=1.
    x = jax.random.normal(kx, (8, 1), jnp.float32)
    y = jax.block_until_ready(logistic_regression_forward(x, weight, bias))
    y_ref = jax.nn.sigmoid(x @ weight.T + bias)
    assert y.shape == (8, 1)
    assert jnp.allclose(y, y_ref, atol=1e-6), "mismatch vs reference (n=8)"

    # A second, ragged batch (not a multiple of the lane width) exercises the
    # pad-then-slice path to make sure padded elements never reach the output.
    x2 = jax.random.normal(kx2, (3000, 1), jnp.float32)
    y2 = jax.block_until_ready(logistic_regression_forward(x2, weight, bias))
    y2_ref = jax.nn.sigmoid(x2 @ weight.T + bias)
    assert y2.shape == (3000, 1)
    assert jnp.allclose(y2, y2_ref, atol=1e-6), "mismatch vs reference (n=3000)"

    print("KERNEL_OK")
</pallas_src>

<mosaic_0001>
module attributes {stable_mosaic.version = 11 : i64} {
  func.func @_logreg_kernel(%arg0: i32, %arg1: memref<1x1xf32, #tpu.memory_space<smem>>, %arg2: memref<1x1xf32, #tpu.memory_space<smem>>, %arg3: memref<8x1024xf32, #tpu.memory_space<vmem>>, %arg4: memref<8x1024xf32, #tpu.memory_space<vmem>>) attributes {dimension_semantics = [#tpu.dimension_semantics<parallel>], iteration_bounds = array<i64: 1>, scalar_prefetch = 0 : i64, scratch_operands = 0 : i64, tpu.core_type = #tpu.core_type<tc>, window_params = [{transform_indices = @transform_0, window_bounds = array<i64: 1, 1>}, {transform_indices = @transform_1, window_bounds = array<i64: 1, 1>}, {transform_indices = @transform_2, window_bounds = array<i64: 8, 1024>}, {transform_indices = @transform_3, window_bounds = array<i64: 8, 1024>}]} {
    %c0 = arith.constant 0 : index
    %c0_0 = arith.constant 0 : index
    %0 = memref.load %arg1[%c0, %c0_0] : memref<1x1xf32, #tpu.memory_space<smem>>
    %c0_1 = arith.constant 0 : index
    %c0_2 = arith.constant 0 : index
    %1 = memref.load %arg2[%c0_1, %c0_2] : memref<1x1xf32, #tpu.memory_space<smem>>
    %c0_3 = arith.constant 0 : index
    %c0_4 = arith.constant 0 : index
    %2 = vector.load %arg3[%c0_3, %c0_4] : memref<8x1024xf32, #tpu.memory_space<vmem>>, vector<8x1024xf32>
    %3 = vector.broadcast %0 : f32 to vector<8x1024xf32>
    %4 = arith.mulf %2, %3 : vector<8x1024xf32>
    %5 = vector.broadcast %1 : f32 to vector<8x1024xf32>
    %6 = arith.addf %4, %5 : vector<8x1024xf32>
    %7 = arith.negf %6 : vector<8x1024xf32>
    %8 = math.exp %7 : vector<8x1024xf32>
    %cst = arith.constant 1.000000e+00 : f32
    %9 = vector.broadcast %cst : f32 to vector<8x1024xf32>
    %10 = arith.addf %9, %8 : vector<8x1024xf32>
    %11 = arith.divf %9, %10 : vector<8x1024xf32>
    %c0_5 = arith.constant 0 : index
    %c0_6 = arith.constant 0 : index
    %12 = vector.load %arg4[%c0_5, %c0_6] : memref<8x1024xf32, #tpu.memory_space<vmem>>, vector<8x1024xf32>
    tpu.vector_store %arg4[%c0_5, %c0_6], %11 {strides = array<i32>} : memref<8x1024xf32, #tpu.memory_space<vmem>>, vector<8x1024xf32>,
    return
  }
  func.func @transform_0(%arg0: i32) -> (i32, i32) {
    %c0_i32 = arith.constant 0 : i32
    %c0_i32_0 = arith.constant 0 : i32
    %c0_i32_1 = arith.constant 0 : i32
    return %c0_i32, %c0_i32_0 : i32, i32
  }
  func.func @transform_1(%arg0: i32) -> (i32, i32) {
    %c0_i32 = arith.constant 0 : i32
    %c0_i32_0 = arith.constant 0 : i32
    %c0_i32_1 = arith.constant 0 : i32
    return %c0_i32, %c0_i32_0 : i32, i32
  }
  func.func @transform_2(%arg0: i32) -> (i32, i32) {
    %c0_i32 = arith.constant 0 : i32
    %c0_i32_0 = arith.constant 0 : i32
    return %arg0, %c0_i32 : i32, i32
  }
  func.func @transform_3(%arg0: i32) -> (i32, i32) {
    %c0_i32 = arith.constant 0 : i32
    %c0_i32_0 = arith.constant 0 : i32
    return %arg0, %c0_i32 : i32, i32
  }
}

</mosaic_0001>

<bundles_post_ra>
// kernel: tpu_custom_call.1
= control target key start
LH: loop header
LB: loop body
LE: loop exit
PB: predicated region body
PF: predicated region fallthrough
CT: control target
= control target key end

     0   :  { %10 = vsyncpa [#allocation5], 0  ;;  %s270_s0 = inlined_call_operand.<no memory space> [shape: f32[1,1], index: 0, kind: input, shape index: {}]   ;;  %s271_s1 = inlined_call_operand.<no memory space> [shape: f32[1,1], index: 1, kind: input, shape index: {}]   ;;  %s272_s2 = inlined_call_operand.hbm [shape: f32[8,1024], index: 2, kind: input, shape index: {}]   ;;  %s273_s3 = inlined_call_operand.hbm [shape: f32[8,1024], index: 3, kind: output, shape index: {}]  }
   0x1   :  { %11 = vsyncpa [#allocation6], 0  ;;  %s218_s12 = smov [#allocation4]   ;;  %s170_s16 = scalar_lea.hbm %s272_s2, 1024 }
   0x2   :  { %s22_s13 = sshll.u32 %s218_s12, 4  ;;  %p171_p0 = scmp.ne.s32.totalorder %s272_s2, %s170_s16  ;;  %s23_s13 = int_to_ptr.vmem [resolvable:$true] %s22_s13 }
   0x3   :  { %p174_p1 = scmp.lt.u32.totalorder %s170_s16, %s272_s2 }
   0x5   :  { %p176_p2 = pnand %p174_p1, %p171_p0 }
   0x7   :  { %179 = shalt.err (!%p176_p2)
}
   0x8   :  { %s180_s21 = scalar_lea.vmem %s23_s13, 1024  ;;  %p185_p4 = scmp.lt.s32.totalorder %s23_s13, %s23_s13 }
   0x9   :  { %p181_p3 = scmp.ne.s32.totalorder %s23_s13, %s180_s21  ;;  %p186_p5 = scmp.lt.s32.totalorder %s180_s21, %s180_s21 }
   0xb   :  { %p187_p6 = por %p186_p5, %p185_p4 }
   0xd   :  { %p188_p7 = pnand %p187_p6, %p181_p3 }
   0xf   :  { %191 = shalt.err (!%p188_p7)
}
  0x10   :  { %25 = dma.hbm_to_vmem [thread:$0]  %s272_s2, 1024, %s23_s13, [#allocation5]  }
  0x11   :  { %214 = dma.done.wait [#allocation5], 1024  }
  0x12   :  { %215 = vsyncadd [#allocation5], 4294966272  ;;  %v39_v0 = vstv %s270_s0  ;;  %v31_v1 = vld [vmem:[#allocation4] sm:$0xff]  ;;  %v48_v2 = vstv %s271_s1  ;;  %v32_v3 = vld [vmem:[#allocation4 + $0x8] sm:$0xff]  ;;  %s219_s0 = smov [#allocation7]  }
  0x13   :  { %v33_v4 = vld [vmem:[#allocation4 + $0x10] sm:$0xff]  ;;  %v40_v5 = vmul.f32 %v39_v0, %v31_v1  ;;  %v41_v6 = vmul.f32 %v39_v0, %v32_v3  ;;  %v34_v8 = vld [vmem:[#allocation4 + $0x18] sm:$0xff]  ;;  %v35_v9 = vld [vmem:[#allocation4 + $0x20] sm:$0xff]  ;;  %s119_s1 = sshll.u32 %s219_s0, 4  ;;  %s120_s1 = int_to_ptr.vmem [resolvable:$true] %s119_s1 }
  0x14   :  { %v42_v7 = vmul.f32 %v39_v0, %v33_v4  ;;  %v36_v10 = vld [vmem:[#allocation4 + $0x28] sm:$0xff]  ;;  %v43_v11 = vmul.f32 %v39_v0, %v34_v8  ;;  %v44_v12 = vmul.f32 %v39_v0, %v35_v9  ;;  %v37_v14 = vld [vmem:[#allocation4 + $0x30] sm:$0xff]  ;;  %v38_v15 = vld [vmem:[#allocation4 + $0x38] sm:$0xff]  ;;  %s192_s2 = scalar_lea.vmem %s120_s1, 1024  ;;  %p197_p9 = scmp.lt.s32.totalorder %s120_s1, %s120_s1 }
  0x15   :  { %v45_v13 = vmul.f32 %v39_v0, %v36_v10  ;;  %v49_v16 = vadd.f32 %v48_v2, %v40_v5  ;;  %v50_v17 = vadd.f32 %v48_v2, %v41_v6  ;;  %v46_v19 = vmul.f32 %v39_v0, %v37_v14  ;;  %p193_p8 = scmp.ne.s32.totalorder %s120_s1, %s192_s2  ;;  %p198_p10 = scmp.lt.s32.totalorder %s192_s2, %s192_s2 }
  0x16   :  { %v51_v18 = vadd.f32 %v48_v2, %v42_v7  ;;  %v52_v20 = vadd.f32 %v48_v2, %v43_v11  ;;  %v53_v21 = vadd.f32 %v48_v2, %v44_v12  ;;  %v47_v23 = vmul.f32 %v39_v0, %v38_v15 }
  0x17   :  { %v54_v22 = vadd.f32 %v48_v2, %v45_v13  ;;  %v128_v24 = vmul.f32 -1.442695, %v49_v16  ;;  %v129_v25 = vmul.f32 -1.442695, %v50_v17  ;;  %v55_v27 = vadd.f32 %v48_v2, %v46_v19  ;;  %p199_p11 = por %p198_p10, %p197_p9 }
  0x18   :  { %v130_v26 = vmul.f32 -1.442695, %v51_v18  ;;  %v131_v28 = vmul.f32 -1.442695, %v52_v20  ;;  %v56_v29 = vadd.f32 %v48_v2, %v47_v23  ;;  %v132_v30 = vmul.f32 -1.442695, %v53_v21 }
  0x19   :  { %138 = vpow2.f32 %v128_v24  ;;  %v133_v31 = vmul.f32 -1.442695, %v54_v22  ;;  %v134_v32 = vmul.f32 -1.442695, %v55_v27  ;;  %p200_p12 = pnand %p199_p11, %p193_p8 }
  0x1a   :  { %140 = vpow2.f32 %v129_v25  ;;  %v135_v33 = vmul.f32 -1.442695, %v56_v29 }
  0x1b   :  { %142 = vpow2.f32 %v130_v26 }
  0x1c   :  { %144 = vpow2.f32 %v131_v28 }
  0x1d   :  { %146 = vpow2.f32 %v132_v30 }
  0x1e   :  { %148 = vpow2.f32 %v133_v31 }
  0x1f   :  { %150 = vpow2.f32 %v134_v32 }
  0x20   :  { %152 = vpow2.f32 %v135_v33 }
  0x23   :  { %v139_v34 = vpop.eup %138 }
  0x24   :  { %v141_v35 = vpop.eup %140  ;;  %v81_v36 = vadd.f32 1.0, %v139_v34 }
  0x25   :  { %v143_v37 = vpop.eup %142  ;;  %v82_v38 = vadd.f32 1.0, %v141_v35 }
  0x26   :  { %v145_v39 = vpop.eup %144  ;;  %154 = vrcp.f32 %v81_v36  ;;  %v83_v40 = vadd.f32 1.0, %v143_v37 }
  0x27   :  { %v147_v41 = vpop.eup %146  ;;  %156 = vrcp.f32 %v82_v38  ;;  %v84_v42 = vadd.f32 1.0, %v145_v39 }
  0x28   :  { %v149_v43 = vpop.eup %148  ;;  %158 = vrcp.f32 %v83_v40  ;;  %v85_v44 = vadd.f32 1.0, %v147_v41 }
  0x29   :  { %v151_v45 = vpop.eup %150  ;;  %160 = vrcp.f32 %v84_v42  ;;  %v86_v46 = vadd.f32 1.0, %v149_v43 }
  0x2a   :  { %v153_v47 = vpop.eup %152  ;;  %162 = vrcp.f32 %v85_v44  ;;  %v87_v48 = vadd.f32 1.0, %v151_v45 }
  0x2b   :  { %164 = vrcp.f32 %v86_v46  ;;  %v88_v49 = vadd.f32 1.0, %v153_v47 }
  0x2c   :  { %166 = vrcp.f32 %v87_v48 }
  0x2d   :  { %168 = vrcp.f32 %v88_v49 }
  0x30   :  { %v155_v50 = vpop.eup %154 }
  0x31   :  { %v157_v51 = vpop.eup %156  ;;  %105 = vst [vmem:[#allocation7] sm:$0xff] %v155_v50 }
  0x32   :  { %v159_v52 = vpop.eup %158  ;;  %106 = vst [vmem:[#allocation7 + $0x8] sm:$0xff] %v157_v51 }
  0x33   :  { %v161_v53 = vpop.eup %160  ;;  %107 = vst [vmem:[#allocation7 + $0x10] sm:$0xff] %v159_v52 }
  0x34   :  { %v163_v54 = vpop.eup %162  ;;  %108 = vst [vmem:[#allocation7 + $0x18] sm:$0xff] %v161_v53 }
  0x35   :  { %v165_v55 = vpop.eup %164  ;;  %109 = vst [vmem:[#allocation7 + $0x20] sm:$0xff] %v163_v54 }
  0x36   :  { %v167_v56 = vpop.eup %166  ;;  %110 = vst [vmem:[#allocation7 + $0x28] sm:$0xff] %v165_v55 }
  0x37   :  { %v169_v57 = vpop.eup %168  ;;  %111 = vst [vmem:[#allocation7 + $0x30] sm:$0xff] %v167_v56 }
  0x38   :  { %112 = vst [vmem:[#allocation7 + $0x38] sm:$0xff] %v169_v57 }
  0x39   :  { %203 = shalt.err (!%p200_p12)
}
  0x3a   :  { %s204_s30 = scalar_lea.hbm %s273_s3, 1024 }
  0x3b   :  { %p205_p13 = scmp.ne.s32.totalorder %s273_s3, %s204_s30  ;;  %p208_p0 = scmp.lt.u32.totalorder %s204_s30, %s273_s3 }
  0x3d   :  { %p210_p1 = pnand %p208_p0, %p205_p13 }
  0x3f   :  { %213 = shalt.err (!%p210_p1)
}
  0x40   :  { %122 = dma.vmem_to_hbm [thread:$0]  %s120_s1, 1024, %s273_s3, [#allocation6]  }
  0x41   :  { %216 = dma.done.wait [#allocation6], 1024  }
  0x42   :  { %217 = vsyncadd [#allocation6], 4294966272 }
  0x43   :  { %126 = vsyncpa [#allocation5], 1 }
  0x44   :  { %127 = vsyncpa [#allocation6], 1 }

</bundles_post_ra>
